<compile_context>
chip_gen: v7x
topology: tpu7x:2x2x1
jax: 0.10.0
libtpu: 0.0.40
codegen_flags: <defaults>
</compile_context>

<pallas_src>
import math

import jax
import jax.numpy as jnp
from jax.experimental import pallas as pl
from jax.experimental.pallas import tpu as pltpu

_INV_LN10 = 1.0 / math.log(10.0)
_LANE = 128
_ACC_ROWS = 8          # one f32 vreg: (8, 128)
_MAX_ROW_BLOCK = 512   # 512 x 128 f32 = 256 KiB per input block
_NUM_CHUNKS = 2        # leading "parallel" grid axis (v7x megacore)


def _make_kernel(row_block, steps_per_chunk, valid_rows, needs_mask):
    """Builds the kernel with static tiling config closed over."""

    def kernel(x_ref, o_ref):
        i = pl.program_id(1)

        # Output block is resident across the reduction axis (constant index
        # map in i) -> it is the accumulator.  Zero it at the start of each
        # parallel chunk.
        @pl.when(i == 0)
        def _():
            o_ref[...] = jnp.zeros_like(o_ref)

        x = x_ref[...].astype(jnp.float32)
        lx = jnp.log(x)  # EUP; the -1/ln(10) scale is applied once at the end

        if needs_mask:
            # Zero contributions from rows past the real data (ragged tail /
            # overhanging boundary blocks whose contents are undefined).
            blk = pl.program_id(0) * steps_per_chunk + i
            row_ids = blk * row_block + jax.lax.broadcasted_iota(
                jnp.int32, (row_block, _LANE), 0)
            lx = jnp.where(row_ids < valid_rows, lx, 0.0)

        # Collapse (row_block, 128) onto the vreg-shaped (8, 128) accumulator
        # with pure VPU adds (no XLU, no narrow masked stores in the loop).
        o_ref[...] += jnp.sum(lx.reshape(-1, _ACC_ROWS, _LANE), axis=0)

    return kernel


def adversarial_loss(d_sr):
    """Pallas equivalent of Adversarial_loss().forward(D_SR) = sum(-log10(D_SR))."""
    x = d_sr.reshape(-1)
    n = x.shape[0]

    # Only pad the (<128-element) lane tail; log10(1) == 0 so the pad is inert.
    lane_pad = (-n) % _LANE
    if lane_pad:
        x = jnp.pad(x, (0, lane_pad), constant_values=1)
    rows = x.shape[0] // _LANE
    x2 = x.reshape(rows, _LANE)

    if rows < _ACC_ROWS:
        # Tiny input: pad up to a single vreg of rows (<= 4 KiB copy).
        x2 = jnp.pad(x2, ((0, _ACC_ROWS - rows), (0, 0)), constant_values=1)
        rows = _ACC_ROWS

    # Adaptive row block: whole array if small, else 512-row tiles (mult of 8).
    row_block = min(_MAX_ROW_BLOCK, (rows // _ACC_ROWS) * _ACC_ROWS)
    steps_total = pl.cdiv(rows, row_block)

    num_chunks = _NUM_CHUNKS if steps_total >= _NUM_CHUNKS else 1
    steps_per_chunk = pl.cdiv(steps_total, num_chunks)

    covered_rows = num_chunks * steps_per_chunk * row_block
    needs_mask = covered_rows != rows                      # ragged tail / overhang
    needs_clamp = num_chunks * steps_per_chunk != steps_total
    last_block = steps_total - 1

    def in_index_map(c, i):
        blk = c * steps_per_chunk + i
        if needs_clamp:
            # A fully-out-of-range trailing block re-reads the last valid
            # block; the in-kernel mask zeroes its contribution.
            blk = jnp.minimum(blk, last_block)
        return (blk, 0)

    kernel = _make_kernel(row_block, steps_per_chunk, rows, needs_mask)

    out = pl.pallas_call(
        kernel,
        out_shape=jax.ShapeDtypeStruct((num_chunks * _ACC_ROWS, _LANE),
                                       jnp.float32),
        grid_spec=pltpu.PrefetchScalarGridSpec(
            num_scalar_prefetch=0,
            grid=(num_chunks, steps_per_chunk),
            in_specs=[pl.BlockSpec((row_block, _LANE), in_index_map)],
            out_specs=pl.BlockSpec((_ACC_ROWS, _LANE), lambda c, i: (c, 0)),
        ),
        compiler_params=pltpu.CompilerParams(
            dimension_semantics=("parallel", "arbitrary")),
    )(x2)

    # Single cross-lane reduce + (-1/ln 10) scale, once, on a few KiB.
    return -jnp.sum(out) * _INV_LN10


if __name__ == "__main__":
    key = jax.random.PRNGKey(0)

    # Primary case: [B, C, H, W] discriminator score map in (0, 1).
    D_SR = jax.random.uniform(
        key, (2, 4, 16, 16), dtype=jnp.float32, minval=0.05, maxval=0.95)
    loss = jax.block_until_ready(adversarial_loss(D_SR))
    ref = jnp.sum(-jnp.log10(D_SR))
    assert jnp.allclose(loss, ref, rtol=1e-5, atol=1e-4), (loss, ref)

    # Ragged case: exercises lane-tail padding + in-kernel row mask.
    k2 = jax.random.PRNGKey(1)
    D2 = jax.random.uniform(
        k2, (3, 7, 33, 9), dtype=jnp.float32, minval=0.05, maxval=0.95)
    l2 = jax.block_until_ready(adversarial_loss(D2))
    r2 = jnp.sum(-jnp.log10(D2))
    assert jnp.allclose(l2, r2, rtol=2e-5, atol=1e-2), (l2, r2)

    # Larger case: exercises 512-row blocks, both parallel chunks, boundary
    # masking and the clamped overhang block.
    k3 = jax.random.PRNGKey(2)
    D3 = jax.random.uniform(
        k3, (2, 4, 128, 130), dtype=jnp.float32, minval=0.05, maxval=0.95)
    l3 = jax.block_until_ready(adversarial_loss(D3))
    r3 = jnp.sum(-jnp.log10(D3))
    assert jnp.allclose(l3, r3, rtol=2e-5, atol=1e-2), (l3, r3)

    print("KERNEL_OK")
</pallas_src>

<mosaic_0001>
module attributes {stable_mosaic.version = 11 : i64} {
  func.func @kernel(%arg0: i32, %arg1: i32, %arg2: memref<16x128xf32, #tpu.memory_space<vmem>>, %arg3: memref<8x128xf32, #tpu.memory_space<vmem>>) attributes {dimension_semantics = [#tpu.dimension_semantics<parallel>, #tpu.dimension_semantics<arbitrary>], iteration_bounds = array<i64: 1, 1>, scalar_prefetch = 0 : i64, scratch_operands = 0 : i64, tpu.core_type = #tpu.core_type<tc>, window_params = [{transform_indices = @transform_0, window_bounds = array<i64: 16, 128>}, {transform_indices = @transform_1, window_bounds = array<i64: 8, 128>}]} {
    %c0_i32 = arith.constant 0 : i32
    %0 = arith.cmpi eq, %arg1, %c0_i32 : i32
    %1 = arith.extui %0 : i1 to i32
    %c0_i32_0 = arith.constant 0 : i32
    %2 = arith.cmpi ne, %1, %c0_i32_0 : i32
    scf.if %2 {
      %cst_6 = arith.constant 0.000000e+00 : f32
      %10 = vector.broadcast %cst_6 : f32 to vector<8x128xf32>
      %c0_7 = arith.constant 0 : index
      %c0_8 = arith.constant 0 : index
      %11 = vector.load %arg3[%c0_7, %c0_8] : memref<8x128xf32, #tpu.memory_space<vmem>>, vector<8x128xf32>
      tpu.vector_store %arg3[%c0_7, %c0_8], %10 {strides = array<i32>} : memref<8x128xf32, #tpu.memory_space<vmem>>, vector<8x128xf32>,
    } else {
    }
    %c0 = arith.constant 0 : index
    %c0_1 = arith.constant 0 : index
    %3 = vector.load %arg2[%c0, %c0_1] : memref<16x128xf32, #tpu.memory_space<vmem>>, vector<16x128xf32>
    %4 = math.log %3 : vector<16x128xf32>
    %c0_2 = arith.constant 0 : index
    %c0_3 = arith.constant 0 : index
    %5 = vector.load %arg3[%c0_2, %c0_3] : memref<8x128xf32, #tpu.memory_space<vmem>>, vector<8x128xf32>
    %6 = vector.shape_cast %4 : vector<16x128xf32> to vector<2x8x128xf32>
    %cst = arith.constant dense<0.000000e+00> : vector<8x128xf32>
    %7 = vector.multi_reduction <add>, %6, %cst [0] : vector<2x8x128xf32> to vector<8x128xf32>
    %8 = arith.addf %5, %7 : vector<8x128xf32>
    %c0_4 = arith.constant 0 : index
    %c0_5 = arith.constant 0 : index
    %9 = vector.load %arg3[%c0_4, %c0_5] : memref<8x128xf32, #tpu.memory_space<vmem>>, vector<8x128xf32>
    tpu.vector_store %arg3[%c0_4, %c0_5], %8 {strides = array<i32>} : memref<8x128xf32, #tpu.memory_space<vmem>>, vector<8x128xf32>,
    return
  }
  func.func @transform_0(%arg0: i32, %arg1: i32) -> (i32, i32) {
    %c1_i32 = arith.constant 1 : i32
    %0 = arith.muli %arg0, %c1_i32 : i32
    %1 = arith.addi %0, %arg1 : i32
    %c0_i32 = arith.constant 0 : i32
    %c0_i32_0 = arith.constant 0 : i32
    return %1, %c0_i32 : i32, i32
  }
  func.func @transform_1(%arg0: i32, %arg1: i32) -> (i32, i32) {
    %c0_i32 = arith.constant 0 : i32
    %c0_i32_0 = arith.constant 0 : i32
    return %arg0, %c0_i32 : i32, i32
  }
}

</mosaic_0001>

<bundles_post_ra>
// kernel: tpu_custom_call.1
= control target key start
LH: loop header
LB: loop body
LE: loop exit
PB: predicated region body
PF: predicated region fallthrough
CT: control target
= control target key end

     0   :  { %6 = vsyncpa [#allocation3], 0  ;;  %s154_s0 = inlined_call_operand.hbm [shape: f32[16,128], index: 0, kind: input, shape index: {}]   ;;  %s155_s1 = inlined_call_operand.hbm [shape: f32[8,128], index: 1, kind: output, shape index: {}]  }
   0x1   :  { %7 = vsyncpa [#allocation4], 0  ;;  %s116_s6 = smov [#allocation2]   ;;  %s68_s10 = scalar_lea.hbm %s154_s0, 256 }
   0x2   :  { %s17_s7 = sshll.u32 %s116_s6, 4  ;;  %p69_p0 = scmp.ne.s32.totalorder %s154_s0, %s68_s10  ;;  %s18_s7 = int_to_ptr.vmem [resolvable:$true] %s17_s7 }
   0x3   :  { %p72_p1 = scmp.lt.u32.totalorder %s68_s10, %s154_s0 }
   0x5   :  { %p74_p2 = pnand %p72_p1, %p69_p0 }
   0x7   :  { %77 = shalt.err (!%p74_p2)
}
   0x8   :  { %s78_s15 = scalar_lea.vmem %s18_s7, 256  ;;  %p83_p4 = scmp.lt.s32.totalorder %s18_s7, %s18_s7 }
   0x9   :  { %p79_p3 = scmp.ne.s32.totalorder %s18_s7, %s78_s15  ;;  %p84_p5 = scmp.lt.s32.totalorder %s78_s15, %s78_s15 }
   0xb   :  { %p85_p6 = por %p84_p5, %p83_p4 }
   0xd   :  { %p86_p7 = pnand %p85_p6, %p79_p3 }
   0xf   :  { %89 = shalt.err (!%p86_p7)
}
  0x10   :  { %s117_s16 = smov 128   ;;  %s118_s17 = smov 8  }
  0x11   :  { %23 = dma.hbm_to_vmem [thread:$0]  %s154_s0, 256, %s18_s7, [#allocation3], %s117_s16, %s117_s16, %s118_s17  }
  0x12   :  { %112 = dma.done.wait [#allocation3], 256  }
  0x13   :  { %113 = vsyncadd [#allocation3], 4294967040  ;;  %v34_v0 = vld [vmem:[#allocation2] sm:$0xff]  ;;  %v35_v1 = vld [vmem:[#allocation2 + $0x8] sm:$0xff]  ;;  %s119_s20 = smov [#allocation5]  }
  0x14   :  { %64 = vlog2.f32 %v34_v0  ;;  %s50_s21 = sshll.u32 %s119_s20, 4  ;;  %s51_s21 = int_to_ptr.vmem [resolvable:$true] %s50_s21 }
  0x15   :  { %66 = vlog2.f32 %v35_v1  ;;  %s90_s22 = scalar_lea.vmem %s51_s21, 128  ;;  %p95_p9 = scmp.lt.s32.totalorder %s51_s21, %s51_s21 }
  0x16   :  { %p91_p8 = scmp.ne.s32.totalorder %s51_s21, %s90_s22  ;;  %p96_p10 = scmp.lt.s32.totalorder %s90_s22, %s90_s22 }
  0x18   :  { %p97_p11 = por %p96_p10, %p95_p9 }
  0x1a   :  { %p98_p12 = pnand %p97_p11, %p91_p8 }
  0x1e   :  { %v65_v2 = vpop.eup %64 }
  0x1f   :  { %v67_v3 = vpop.eup %66  ;;  %v37_v4 = vmul.f32 0.6931472, %v65_v2 }
  0x20   :  { %v39_v5 = vmul.f32 0.6931472, %v67_v3 }
  0x22   :  { %v41_v6 = vadd.f32 %v39_v5, %v37_v4 }
  0x24   :  { %43 = vst [vmem:[#allocation5] sm:$0xff] %v41_v6 }
  0x25   :  { %101 = shalt.err (!%p98_p12)
}
  0x26   :  { %s102_s24 = scalar_lea.hbm %s155_s1, 128 }
  0x27   :  { %p103_p13 = scmp.ne.s32.totalorder %s155_s1, %s102_s24  ;;  %p106_p0 = scmp.lt.u32.totalorder %s102_s24, %s155_s1 }
  0x29   :  { %p108_p1 = pnand %p106_p0, %p103_p13 }
  0x2b   :  { %111 = shalt.err (!%p108_p1)
}
  0x2c   :  { %53 = dma.vmem_to_hbm [thread:$0]  %s51_s21, 128, %s155_s1, [#allocation4]  }
  0x2d   :  { %114 = dma.done.wait [#allocation4], 128  }
  0x2e   :  { %115 = vsyncadd [#allocation4], 4294967168 }
  0x2f   :  { %57 = vsyncpa [#allocation3], 1 }
  0x30   :  { %58 = vsyncpa [#allocation4], 1 }

</bundles_post_ra>
